<compile_context>
chip_gen: v6e
topology: v6e:2x2x1
jax: 0.10.0
libtpu: 0.0.40
codegen_flags: <defaults>
</compile_context>

<pallas_src>
import math
from functools import partial

import numpy as np
import jax
import jax.numpy as jnp
from jax.experimental import pallas as pl
from jax.experimental.pallas import tpu as pltpu

LANE = 128          # TPU lane width: pad all feature dims to this
HEAD_BLOCK = 128    # per-attention-head padded block (keeps slices on 128 bounds)


def _round_up(x, m):
    return ((x + m - 1) // m) * m


# ---------------------------------------------------------------------------
# In-kernel helpers
# ---------------------------------------------------------------------------
def _gelu(x):
    # tanh-approx GELU (torch exact-erf differs by <1e-3)
    return 0.5 * x * (1.0 + jnp.tanh(0.7978845608028654 * (x + 0.044715 * x * x * x)))


def _ln(x, g, b, d_real, eps=1e-5):
    """LayerNorm over the first `d_real` lanes of a zero-padded [rows, 128k] slab.

    Padded lanes of the output stay exactly 0 (beta is zero-padded)."""
    lane = jax.lax.broadcasted_iota(jnp.int32, x.shape, x.ndim - 1)
    m = lane < d_real
    inv_d = 1.0 / float(d_real)
    xm = jnp.where(m, x, 0.0)
    mu = jnp.sum(xm, axis=-1, keepdims=True) * inv_d
    xc = jnp.where(m, x - mu, 0.0)
    var = jnp.sum(xc * xc, axis=-1, keepdims=True) * inv_d
    return xc * jax.lax.rsqrt(var + eps) * g + b


def _bf(x):
    return x.astype(jnp.bfloat16)


# ---------------------------------------------------------------------------
# Fused Pallas kernels
# ---------------------------------------------------------------------------
def _embed_kernel(xu_ref, pe_ref, w_ref, b_ref, o_ref):
    # token conv (as matmul on unfolded input) + bias + positional encoding
    y = jnp.dot(_bf(xu_ref[...]), w_ref[...], preferred_element_type=jnp.float32)
    o_ref[...] = y + b_ref[...] + pe_ref[...]


def _kgat_kernel(x_ref, win_ref, bin_ref, at_ref, wout_ref, bout_ref,
                 g_ref, be_ref, o_ref, *, d_model):
    x = x_ref[...]
    h = jnp.dot(_bf(x), win_ref[...], preferred_element_type=jnp.float32) + bin_ref[...]
    ha = _gelu(jnp.dot(_bf(h), at_ref[...], preferred_element_type=jnp.float32))
    y = jnp.dot(_bf(ha), wout_ref[...], preferred_element_type=jnp.float32) + bout_ref[...]
    o_ref[...] = _ln(x + y, g_ref[...], be_ref[...], d_model)


def _attn_block_kernel(x_ref, wqkv_ref, bqkv_ref, wo_ref, bo_ref,
                       ln1g_ref, ln1b_ref, w1_ref, b1_ref, w2_ref, b2_ref,
                       ln2g_ref, ln2b_ref, ng_ref, nb_ref, o_ref,
                       *, n_heads, d_model, d_head):
    tb, S, Dp = x_ref.shape
    HB = HEAD_BLOCK
    x3 = x_ref[...]
    x = x3.reshape(tb * S, Dp)

    # fused Q|K|V projection (head-major, 128-padded per head -> lane-dense slices)
    qkv = jnp.dot(_bf(x), wqkv_ref[...], preferred_element_type=jnp.float32) + bqkv_ref[...]
    qkv3 = qkv.reshape(tb, S, 3 * n_heads * HB)

    scale = 1.0 / math.sqrt(float(d_head))
    ctx = []
    for h in range(n_heads):
        qh = qkv3[:, :, h * HB:(h + 1) * HB]
        kh = qkv3[:, :, (n_heads + h) * HB:(n_heads + h + 1) * HB]
        vh = qkv3[:, :, (2 * n_heads + h) * HB:(2 * n_heads + h + 1) * HB]
        s = jnp.einsum("bqd,bkd->bqk", _bf(qh), _bf(kh),
                       preferred_element_type=jnp.float32) * scale
        s = s - jnp.max(s, axis=-1, keepdims=True)
        p = jnp.exp(s)
        p = p * pl.reciprocal(jnp.sum(p, axis=-1, keepdims=True), approx=True)
        ctx.append(jnp.einsum("bqk,bkd->bqd", _bf(p), _bf(vh),
                              preferred_element_type=jnp.float32))
    ctx = jnp.concatenate(ctx, axis=-1).reshape(tb * S, n_heads * HB)

    attn_out = jnp.dot(_bf(ctx), wo_ref[...],
                       preferred_element_type=jnp.float32) + bo_ref[...]
    xr = _ln(x + attn_out, ln1g_ref[...], ln1b_ref[...], d_model)           # norm1
    y = _gelu(jnp.dot(_bf(xr), w1_ref[...],
                      preferred_element_type=jnp.float32) + b1_ref[...])    # conv1 + gelu
    y = jnp.dot(_bf(y), w2_ref[...],
                preferred_element_type=jnp.float32) + b2_ref[...]           # conv2
    z = _ln(xr + y, ln2g_ref[...], ln2b_ref[...], d_model)                  # norm2
    out = _gelu(_ln(z, ng_ref[...], nb_ref[...], d_model))                  # ScaleGraphBlock norm + gelu
    o_ref[...] = out.reshape(tb, S, Dp)


def _combine_ln_kernel(*refs, k, d_model):
    # weighted sum over scales + residual + outer LayerNorm
    res_refs = refs[:k]
    sw_ref, x_ref, g_ref, b_ref, o_ref = refs[k:]
    sw = sw_ref[...]
    y = x_ref[...]
    for i in range(k):
        y = y + res_refs[i][...] * sw[:, i:i + 1]
    o_ref[...] = _ln(y, g_ref[...], b_ref[...], d_model)


def _proj_kernel(x_ref, sd_ref, mu_ref, w_ref, b_ref, o_ref):
    y = jnp.dot(_bf(x_ref[...]), w_ref[...],
                preferred_element_type=jnp.float32) + b_ref[...]
    o_ref[...] = y * sd_ref[...] + mu_ref[...]


# ---------------------------------------------------------------------------
# pallas_call wrappers
# ---------------------------------------------------------------------------
def _const_spec(c):
    nd = c.ndim
    return pl.BlockSpec(c.shape, lambda i, nd=nd: (0,) * nd)


def _row_call(kernel, row_inputs, const_inputs, out_cols, tm_max=512):
    """Run `kernel` over row tiles.  All row_inputs share the leading M dim."""
    M = row_inputs[0].shape[0]
    tm = min(_round_up(M, 8), tm_max)
    Mp = _round_up(M, tm)
    padded = [jnp.pad(a, ((0, Mp - M), (0, 0))) if Mp != M else a for a in row_inputs]
    in_specs = [pl.BlockSpec((tm, a.shape[1]), lambda i: (i, 0)) for a in padded]
    in_specs += [_const_spec(c) for c in const_inputs]
    out = pl.pallas_call(
        kernel,
        grid=(Mp // tm,),
        in_specs=in_specs,
        out_specs=pl.BlockSpec((tm, out_cols), lambda i: (i, 0)),
        out_shape=jax.ShapeDtypeStruct((Mp, out_cols), jnp.float32),
        compiler_params=pltpu.CompilerParams(dimension_semantics=("parallel",)),
    )(*padded, *const_inputs)
    return out[:M] if Mp != M else out


def embed_apply(xu, pe_rows, w_tok, b_tok):
    return _row_call(_embed_kernel, [xu, pe_rows], [w_tok, b_tok],
                     out_cols=w_tok.shape[1])


def kgat_apply(gp, x_flat, d_model):
    return _row_call(
        partial(_kgat_kernel, d_model=d_model),
        [x_flat],
        [gp["w_in"], gp["b_in"], gp["at"], gp["w_out"], gp["b_out"],
         gp["ln_g"], gp["ln_b"]],
        out_cols=x_flat.shape[1])


def attn_block_apply(ap, x3, n_heads, d_model, max_rows=512):
    """x3: (Bb, S, Dp) -> (Bb, S, Dp); whole heads processed in one grid step."""
    Bb, S, Dp = x3.shape
    tb = 1
    for d in range(1, Bb + 1):
        if Bb % d == 0 and d * S <= max_rows:
            tb = d
    consts = [ap["wqkv"], ap["bqkv"], ap["wo"], ap["bo"],
              ap["ln1_g"], ap["ln1_b"], ap["w1"], ap["b1"],
              ap["w2"], ap["b2"], ap["ln2_g"], ap["ln2_b"],
              ap["norm_g"], ap["norm_b"]]
    in_specs = [pl.BlockSpec((tb, S, Dp), lambda i: (i, 0, 0))]
    in_specs += [_const_spec(c) for c in consts]
    return pl.pallas_call(
        partial(_attn_block_kernel, n_heads=n_heads, d_model=d_model,
                d_head=d_model // n_heads),
        grid=(Bb // tb,),
        in_specs=in_specs,
        out_specs=pl.BlockSpec((tb, S, Dp), lambda i: (i, 0, 0)),
        out_shape=jax.ShapeDtypeStruct((Bb, S, Dp), jnp.float32),
        compiler_params=pltpu.CompilerParams(dimension_semantics=("parallel",)),
    )(x3, *consts)


def combine_ln_apply(res_list, sw_rows, x_flat, g, b, d_model):
    k = len(res_list)
    return _row_call(
        partial(_combine_ln_kernel, k=k, d_model=d_model),
        list(res_list) + [sw_rows, x_flat],
        [g, b],
        out_cols=x_flat.shape[1])


def proj_apply(hp, enc_flat, sd_rows, mu_rows):
    return _row_call(_proj_kernel, [enc_flat, sd_rows, mu_rows],
                     [hp["proj_w"], hp["proj_b"]],
                     out_cols=hp["proj_w"].shape[1])


# ---------------------------------------------------------------------------
# Parameters (deterministic synthetic init, logical shapes)
# ---------------------------------------------------------------------------
def sinusoidal_pe(max_len, d_model):
    pe = np.zeros((max_len, d_model), np.float32)
    pos = np.arange(max_len, dtype=np.float32)[:, None]
    div = np.exp(np.arange(0, d_model, 2, dtype=np.float32) * -(math.log(10000.0) / d_model))
    pe[:, 0::2] = np.sin(pos * div)
    pe[:, 1::2] = np.cos(pos * div)
    return jnp.asarray(pe)


def init_params(key, cfg):
    D, Dff, C = cfg["d_model"], cfg["d_ff"], cfg["c_out"]
    nd, nrel = cfg["node_dim"], cfg["num_relations"]
    keys = iter(jax.random.split(key, 512))

    def w(shape, scale=0.02):
        return jax.random.normal(next(keys), shape, jnp.float32) * scale

    zeros = lambda s: jnp.zeros(s, jnp.float32)
    ones = lambda s: jnp.ones(s, jnp.float32)

    def attn_block():
        return dict(
            wq=w((D, D)), bq=zeros((1, D)),
            wk=w((D, D)), bk=zeros((1, D)),
            wv=w((D, D)), bv=zeros((1, D)),
            wo=w((D, D)), bo=zeros((1, D)),
            w1=w((D, Dff)), b1=zeros((1, Dff)),
            w2=w((Dff, D)), b2=zeros((1, D)),
            ln1_g=ones((1, D)), ln1_b=zeros((1, D)),
            ln2_g=ones((1, D)), ln2_b=zeros((1, D)),
        )

    def kgat_blk():
        return dict(
            W_in=w((D, C)), b_in=zeros((1, C)),
            node_emb=w((C, nd), 1.0), rel_emb=w((nrel, nd), 1.0),
            W_out=w((C, D)), b_out=zeros((1, D)),
            ln_g=ones((1, D)), ln_b=zeros((1, D)),
        )

    def scale_graph_blk():
        return dict(
            att0=attn_block(),
            norm_g=ones((1, D)), norm_b=zeros((1, D)),
            gconv=[kgat_blk() for _ in range(cfg["top_k"])],
        )

    return dict(
        emb=dict(W_tok=w((3 * cfg["enc_in"], D)),
                 b_tok=zeros((1, D)),                     # Conv1d bias=False
                 pe=sinusoidal_pe(cfg["seq_len"], D)),
        blocks=[scale_graph_blk() for _ in range(cfg["e_layers"])],
        layer_norm_g=ones((1, D)), layer_norm_b=zeros((1, D)),
        proj_w=w((D, C)), proj_b=zeros((1, C)),
    )


# ---------------------------------------------------------------------------
# One-time packing: zero-pad to 128 lanes, bf16 weights, fused QKV, precompute A
# ---------------------------------------------------------------------------
def _place(dst_shape, src):
    z = np.zeros(dst_shape, np.float32)
    s = np.asarray(src, np.float32)
    z[:s.shape[0], :s.shape[1]] = s
    return z


def prepare_params(params, cfg, adj_list, edge_type_list):
    D, Dff, C, H = cfg["d_model"], cfg["d_ff"], cfg["c_out"], cfg["n_heads"]
    dh = D // H
    assert dh <= HEAD_BLOCK
    Dp, Dffp, Cp = _round_up(D, LANE), _round_up(Dff, LANE), _round_up(C, LANE)
    Ktp = _round_up(3 * cfg["enc_in"], LANE)
    HB = HEAD_BLOCK

    as_bf = lambda a: jnp.asarray(a, jnp.bfloat16)
    as_f = lambda a: jnp.asarray(a, jnp.float32)

    emb = dict(
        w_tok=as_bf(_place((Ktp, Dp), params["emb"]["W_tok"])),
        b_tok=as_f(_place((1, Dp), params["emb"]["b_tok"])),
        pe=as_f(_place((cfg["seq_len"], Dp), params["emb"]["pe"])),
    )

    def prep_attn(a, norm_g, norm_b):
        wqkv = np.zeros((Dp, 3 * H * HB), np.float32)
        bqkv = np.zeros((1, 3 * H * HB), np.float32)
        for gi, (wn, bn) in enumerate((("wq", "bq"), ("wk", "bk"), ("wv", "bv"))):
            wmat = np.asarray(a[wn], np.float32)
            bvec = np.asarray(a[bn], np.float32)
            for h in range(H):
                c0 = (gi * H + h) * HB
                wqkv[:D, c0:c0 + dh] = wmat[:, h * dh:(h + 1) * dh]
                bqkv[:, c0:c0 + dh] = bvec[:, h * dh:(h + 1) * dh]
        wo = np.zeros((H * HB, Dp), np.float32)
        wo_src = np.asarray(a["wo"], np.float32)
        for h in range(H):
            wo[h * HB:h * HB + dh, :D] = wo_src[h * dh:(h + 1) * dh, :]
        return dict(
            wqkv=as_bf(wqkv), bqkv=as_f(bqkv),
            wo=as_bf(wo), bo=as_f(_place((1, Dp), a["bo"])),
            ln1_g=as_f(_place((1, Dp), a["ln1_g"])), ln1_b=as_f(_place((1, Dp), a["ln1_b"])),
            w1=as_bf(_place((Dp, Dffp), a["w1"])), b1=as_f(_place((1, Dffp), a["b1"])),
            w2=as_bf(_place((Dffp, Dp), a["w2"])), b2=as_f(_place((1, Dp), a["b2"])),
            ln2_g=as_f(_place((1, Dp), a["ln2_g"])), ln2_b=as_f(_place((1, Dp), a["ln2_b"])),
            norm_g=as_f(_place((1, Dp), norm_g)), norm_b=as_f(_place((1, Dp), norm_b)),
        )

    def prep_kgat(g, adj, edge_type):
        # relational attention coefficients depend only on params + static graph
        E = g["node_emb"]
        R = g["rel_emb"][edge_type]
        logits = jnp.einsum("id,ijd->ij", E, E[None, :, :] + R)
        logits = jax.nn.leaky_relu(logits, 0.2)
        mask = adj > 0
        A = jax.nn.softmax(jnp.where(mask, logits, -1e9), axis=-1)
        A = jnp.where(mask.any(axis=-1, keepdims=True), A, 0.0)
        At = np.asarray(jax.device_get(A)).T
        return dict(
            w_in=as_bf(_place((Dp, Cp), g["W_in"])),
            b_in=as_f(_place((1, Cp), g["b_in"])),
            at=as_bf(_place((Cp, Cp), At)),
            w_out=as_bf(_place((Cp, Dp), g["W_out"])),
            b_out=as_f(_place((1, Dp), g["b_out"])),
            ln_g=as_f(_place((1, Dp), g["ln_g"])),
            ln_b=as_f(_place((1, Dp), g["ln_b"])),
        )

    og = as_f(_place((1, Dp), params["layer_norm_g"]))
    ob = as_f(_place((1, Dp), params["layer_norm_b"]))
    blocks = []
    for li, bp in enumerate(params["blocks"]):
        blocks.append(dict(
            att0=prep_attn(bp["att0"], bp["norm_g"], bp["norm_b"]),
            gconv=[prep_kgat(bp["gconv"][i], adj_list[li][i], edge_type_list[li][i])
                   for i in range(cfg["top_k"])],
            outer_ln_g=og, outer_ln_b=ob,
        ))

    head = dict(proj_w=as_bf(_place((Dp, Cp), params["proj_w"])),
                proj_b=as_f(_place((1, Cp), params["proj_b"])))
    return dict(emb=emb, blocks=blocks, head=head)


# ---------------------------------------------------------------------------
# Forward pass (glue jitted; one tiny host sync per layer for the FFT periods)
# ---------------------------------------------------------------------------
@jax.jit
def _embed_jit(ep, x_enc):
    B, T, C = x_enc.shape
    means = jnp.mean(x_enc, axis=1, keepdims=True)
    xc = x_enc - means
    stdev = jnp.sqrt(jnp.var(xc, axis=1, keepdims=True) + 1e-5)   # unbiased=False
    xn = xc / stdev
    # Conv1d(enc_in->d_model, k=3, circular pad) == unfold + matmul
    x_unf = jnp.concatenate(
        [jnp.roll(xn, 1, axis=1), xn, jnp.roll(xn, -1, axis=1)], axis=-1)
    Ktp = ep["w_tok"].shape[0]
    xu = jnp.pad(x_unf.reshape(B * T, 3 * C), ((0, 0), (0, Ktp - 3 * C)))
    pe_rows = jnp.tile(ep["pe"], (B, 1))                          # (B*T, Dp)
    enc = embed_apply(xu, pe_rows, ep["w_tok"], ep["b_tok"])      # (B*T, Dp)
    return enc, means, stdev


@partial(jax.jit, static_argnames=("k", "seq_len", "d_model"))
def _fft_jit(enc_flat, k, seq_len, d_model):
    T = seq_len
    B = enc_flat.shape[0] // T
    x3 = enc_flat.reshape(B, T, -1)[:, :, :d_model]
    xf = jnp.fft.rfft(x3, axis=1)
    amp = jnp.abs(xf)                                # (B, F, D)
    freq = amp.mean(axis=0).mean(axis=-1)            # (F,)
    freq = freq.at[0].set(0.0)
    amp_bn = amp.mean(axis=-1)                       # (B, F)
    _, top = jax.lax.top_k(freq, k)
    return top, amp_bn


@partial(jax.jit, static_argnames=("scales", "seq_len", "n_heads", "d_model"))
def _layer_jit(lp, enc_flat, sw, scales, seq_len, n_heads, d_model):
    T = seq_len
    Dp = enc_flat.shape[1]
    B = enc_flat.shape[0] // T
    k = len(scales)

    x = enc_flat
    res = []
    for i in range(k):
        scale = scales[i]
        x = kgat_apply(lp["gconv"][i], x, d_model)               # (B*T, Dp)
        x3 = x.reshape(B, T, Dp)
        if T % scale != 0:
            length = (T // scale + 1) * scale
            x3p = jnp.pad(x3, ((0, 0), (0, length - T), (0, 0)))
        else:
            length = T
            x3p = x3
        out = x3p.reshape(B * (length // scale), scale, Dp)
        out = attn_block_apply(lp["att0"], out, n_heads, d_model)   # fused MHA+FFN+norm+gelu
        out = out.reshape(B, length, Dp)[:, :T, :].reshape(B * T, Dp)
        res.append(out)

    swn = jax.nn.softmax(sw, axis=1)                              # (B, k)
    sw_rows = jnp.repeat(swn, T, axis=0)                          # (B*T, k)
    sw_rows = jnp.pad(sw_rows, ((0, 0), (0, LANE - k)))
    # weighted sum over scales + residual (post-gconv x) + outer LayerNorm, fused
    return combine_ln_apply(res, sw_rows, x, lp["outer_ln_g"], lp["outer_ln_b"], d_model)


@jax.jit
def _head_jit(hp, enc_flat, means, stdev):
    B, _, C = means.shape
    M = enc_flat.shape[0]
    T = M // B
    Cp = hp["proj_w"].shape[1]
    sd = jnp.pad(jnp.repeat(stdev[:, 0, :], T, axis=0), ((0, 0), (0, Cp - C)))
    mu = jnp.pad(jnp.repeat(means[:, 0, :], T, axis=0), ((0, 0), (0, Cp - C)))
    dec = proj_apply(hp, enc_flat, sd, mu)                        # proj + de-normalize
    return dec[:, :C].reshape(B, T, C)


def model_forward(prep, x_enc, cfg):
    T, D, H, k = cfg["seq_len"], cfg["d_model"], cfg["n_heads"], cfg["top_k"]
    enc, means, stdev = _embed_jit(prep["emb"], x_enc)
    for layer in range(cfg["e_layers"]):
        top, amp_bn = _fft_jit(enc, k=k, seq_len=T, d_model=D)
        # TODO(synk): the data-dependent reshape needs concrete period ints, so one
        # small host sync per layer remains (top_k runs on device; only k int32s move).
        top_np = np.maximum(np.asarray(jax.device_get(top)), 1)
        scales = tuple(int(T // int(t)) for t in top_np)
        sw = amp_bn[:, top_np]                                    # (B, k) scale weights
        enc = _layer_jit(prep["blocks"][layer], enc, sw,
                         scales=scales, seq_len=T, n_heads=H, d_model=D)
    return _head_jit(prep["head"], enc, means, stdev)


# ---------------------------------------------------------------------------
if __name__ == "__main__":
    cfg = dict(seq_len=16, pred_len=0, enc_in=4, c_out=4, d_model=32, d_ff=64,
               n_heads=4, top_k=2, e_layers=1, node_dim=8, num_relations=3)

    key = jax.random.PRNGKey(0)
    pkey, xkey = jax.random.split(key)
    params = init_params(pkey, cfg)
    x_enc = jax.random.normal(xkey, (2, cfg["seq_len"], cfg["enc_in"]), jnp.float32)

    C, nrel = cfg["c_out"], cfg["num_relations"]
    adj_np = np.ones((C, C), np.float32)
    et_np = ((np.arange(C)[:, None] - np.arange(C)[None, :]) % nrel).astype(np.int32)
    adj_list = [[jnp.asarray(adj_np) for _ in range(cfg["top_k"])]
                for _ in range(cfg["e_layers"])]
    edge_type_list = [[jnp.asarray(et_np) for _ in range(cfg["top_k"])]
                      for _ in range(cfg["e_layers"])]

    prep = prepare_params(params, cfg, adj_list, edge_type_list)
    out = model_forward(prep, x_enc, cfg)
    jax.block_until_ready(out)
    assert out.shape == (2, cfg["seq_len"], cfg["c_out"]), out.shape
    print("KERNEL_OK")
</pallas_src>

<mosaic_0001>
module attributes {stable_mosaic.version = 11 : i64} {
  func.func @_embed_kernel(%arg0: i32, %arg1: memref<32x128xf32, #tpu.memory_space<vmem>>, %arg2: memref<32x128xf32, #tpu.memory_space<vmem>>, %arg3: memref<128x128xbf16, #tpu.memory_space<vmem>>, %arg4: memref<1x128xf32, #tpu.memory_space<vmem>>, %arg5: memref<32x128xf32, #tpu.memory_space<vmem>>) attributes {dimension_semantics = [#tpu.dimension_semantics<parallel>], iteration_bounds = array<i64: 1>, scalar_prefetch = 0 : i64, scratch_operands = 0 : i64, tpu.core_type = #tpu.core_type<tc>, window_params = [{transform_indices = @transform_0, window_bounds = array<i64: 32, 128>}, {transform_indices = @transform_1, window_bounds = array<i64: 32, 128>}, {pipeline_mode = #tpu.pipeline_mode<synchronous>, transform_indices = @transform_2, window_bounds = array<i64: 128, 128>}, {pipeline_mode = #tpu.pipeline_mode<synchronous>, transform_indices = @transform_3, window_bounds = array<i64: 1, 128>}, {transform_indices = @transform_4, window_bounds = array<i64: 32, 128>}]} {
    %c0 = arith.constant 0 : index
    %c0_0 = arith.constant 0 : index
    %0 = vector.load %arg1[%c0, %c0_0] : memref<32x128xf32, #tpu.memory_space<vmem>>, vector<32x128xf32>
    %1 = arith.truncf %0 : vector<32x128xf32> to vector<32x128xbf16>
    %c0_1 = arith.constant 0 : index
    %c0_2 = arith.constant 0 : index
    %2 = vector.load %arg3[%c0_1, %c0_2] : memref<128x128xbf16, #tpu.memory_space<vmem>>, vector<128x128xbf16>
    %cst = arith.constant dense<0.000000e+00> : vector<32x128xf32>
    %3 = tpu.matmul %1, %2, %cst {dimension_numbers = #tpu.dot_dimension_numbers<[1], [0], [0], [1], [0, 0, 1, 1], [], []>} : vector<32x128xbf16>, vector<128x128xbf16>, vector<32x128xf32> -> vector<32x128xf32>
    %c0_3 = arith.constant 0 : index
    %c0_4 = arith.constant 0 : index
    %4 = vector.load %arg4[%c0_3, %c0_4] : memref<1x128xf32, #tpu.memory_space<vmem>>, vector<1x128xf32>
    %5 = vector.broadcast %4 : vector<1x128xf32> to vector<32x128xf32>
    %6 = arith.addf %3, %5 : vector<32x128xf32>
    %c0_5 = arith.constant 0 : index
    %c0_6 = arith.constant 0 : index
    %7 = vector.load %arg2[%c0_5, %c0_6] : memref<32x128xf32, #tpu.memory_space<vmem>>, vector<32x128xf32>
    %8 = arith.addf %6, %7 : vector<32x128xf32>
    %c0_7 = arith.constant 0 : index
    %c0_8 = arith.constant 0 : index
    %9 = vector.load %arg5[%c0_7, %c0_8] : memref<32x128xf32, #tpu.memory_space<vmem>>, vector<32x128xf32>
    tpu.vector_store %arg5[%c0_7, %c0_8], %8 {strides = array<i32>} : memref<32x128xf32, #tpu.memory_space<vmem>>, vector<32x128xf32>,
    return
  }
  func.func @transform_0(%arg0: i32) -> (i32, i32) {
    %c0_i32 = arith.constant 0 : i32
    %c0_i32_0 = arith.constant 0 : i32
    return %arg0, %c0_i32 : i32, i32
  }
  func.func @transform_1(%arg0: i32) -> (i32, i32) {
    %c0_i32 = arith.constant 0 : i32
    %c0_i32_0 = arith.constant 0 : i32
    return %arg0, %c0_i32 : i32, i32
  }
  func.func @transform_2(%arg0: i32) -> (i32, i32) {
    %c0_i32 = arith.constant 0 : i32
    %c0_i32_0 = arith.constant 0 : i32
    %c0_i32_1 = arith.constant 0 : i32
    return %c0_i32, %c0_i32_0 : i32, i32
  }
  func.func @transform_3(%arg0: i32) -> (i32, i32) {
    %c0_i32 = arith.constant 0 : i32
    %c0_i32_0 = arith.constant 0 : i32
    %c0_i32_1 = arith.constant 0 : i32
    return %c0_i32, %c0_i32_0 : i32, i32
  }
  func.func @transform_4(%arg0: i32) -> (i32, i32) {
    %c0_i32 = arith.constant 0 : i32
    %c0_i32_0 = arith.constant 0 : i32
    return %arg0, %c0_i32 : i32, i32
  }
}

</mosaic_0001>

<bundles_post_ra>
// kernel: _embed_jit.1
= control target key start
LH: loop header
LB: loop body
LE: loop exit
PB: predicated region body
PF: predicated region fallthrough
CT: control target
= control target key end

     0   :  { %s327_s0 = inlined_call_operand.vmem [shape: f32[32,128], index: 0, kind: input, shape index: {}]   ;;  %s328_s1 = inlined_call_operand.vmem [shape: f32[32,128], index: 1, kind: input, shape index: {}]   ;;  %s329_s2 = inlined_call_operand.vmem [shape: bf16[128,128], index: 2, kind: input, shape index: {}]   ;;  %s330_s3 = inlined_call_operand.vmem [shape: f32[1,128], index: 3, kind: input, shape index: {}]   ;;  %s331_s4 = inlined_call_operand.hbm [shape: f32[32,128], index: 4, kind: output, shape index: {}]  }
   0x1   :  { %v215_v0 = vld [vmem:[%s329_s2 + $0x38] sm:$0xff]   ;;  %v216_v1 = vld [vmem:[%s329_s2 + $0x30] sm:$0xff]   ;;  %v217_v2 = vld [vmem:[%s329_s2 + $0x28] sm:$0xff]  }
   0x2   :  { %192 = vmatprep.subr.bf16.mxu0 %v215_v0  ;;  %v218_v3 = vld [vmem:[%s329_s2 + $0x20] sm:$0xff]   ;;  %v20_v5 = vld [vmem:[%s327_s0 + $0x8] sm:$0xff] }
   0x3   :  { %193 = vmatpush3.bf16.msra.mxu0 %v215_v0  ;;  %v19_v4 = vld [vmem:[%s327_s0] sm:$0xff] }
   0x4   :  { %194 = vmatprep.subr.bf16.mxu0 %v216_v1  ;;  %v23_v6 = vpack.c.bf16 %v20_v5, %v19_v4 }
   0x7   :  { %195 = vmatpush3.bf16.msra.mxu0 %v216_v1 }
   0x8   :  { %196 = vmatprep.subr.bf16.mxu0 %v217_v2 }
   0x9   :  { %9 = vsyncpa [#allocation3], 0  ;;  %208 = vmatprep.mubr.bf16.mxu0 %v23_v6  ;;  %v219_v7 = vld [vmem:[%s329_s2 + $0x18] sm:$0xff]   ;;  %v220_v8 = vld [vmem:[%s329_s2 + $0x10] sm:$0xff]  }
   0xa   :  { %v221_v9 = vld [vmem:[%s329_s2 + $0x8] sm:$0xff]   ;;  %v222_v10 = vld [vmem:[%s329_s2] sm:$0xff]   ;;  %v21_v11 = vld [vmem:[%s327_s0 + $0x10] sm:$0xff] }
   0xb   :  { %197 = vmatpush3.bf16.msra.mxu0 %v217_v2  ;;  %v22_v12 = vld [vmem:[%s327_s0 + $0x18] sm:$0xff]  ;;  %v173_v14 = vld [vmem:[%s330_s3] ss:$0 sm:$0xff]  ;;  %v147_v16 = vld [vmem:[%s328_s1 + $0x10] sm:$0xff]  ;;  %s245_s3 = smov [#allocation2]  }
   0xc   :  { %198 = vmatprep.subr.bf16.mxu0 %v218_v3  ;;  %v24_v13 = vpack.c.bf16 %v22_v12, %v21_v11  ;;  %v145_v19 = vld [vmem:[%s328_s1] sm:$0xff]  ;;  %v148_v23 = vld [vmem:[%s328_s1 + $0x18] sm:$0xff]  ;;  %s162_s19 = sshll.u32 %s245_s3, 4  ;;  %v146_v27 = vld [vmem:[%s328_s1 + $0x8] sm:$0xff]  ;;  %s163_s19 = int_to_ptr.vmem [resolvable:$true] %s162_s19 }
   0xd   :  { %s223_s22 = scalar_lea.vmem %s163_s19, 512  ;;  %p228_p1 = scmp.lt.s32.totalorder %s163_s19, %s163_s19 }
   0xe   :  { %p224_p0 = scmp.ne.s32.totalorder %s163_s19, %s223_s22  ;;  %p229_p2 = scmp.lt.s32.totalorder %s223_s22, %s223_s22 }
   0xf   :  { %199 = vmatpush3.bf16.msra.mxu0 %v218_v3 }
  0x10   :  { %200 = vmatprep.subr.bf16.mxu0 %v219_v7  ;;  %p230_p3 = por %p229_p2, %p228_p1 }
  0x12   :  { %p231_p4 = pnand %p230_p3, %p224_p0 }
  0x13   :  { %201 = vmatpush3.bf16.msra.mxu0 %v219_v7 }
  0x14   :  { %202 = vmatprep.subr.bf16.mxu0 %v220_v8 }
  0x17   :  { %203 = vmatpush3.bf16.msra.mxu0 %v220_v8 }
  0x18   :  { %204 = vmatprep.subr.bf16.mxu0 %v221_v9 }
  0x1b   :  { %205 = vmatpush3.bf16.msra.mxu0 %v221_v9 }
  0x1c   :  { %206 = vmatprep.subr.bf16.mxu0 %v222_v10 }
  0x1f   :  { %207 = vmatpush3.bf16.msra.mxu0 %v222_v10 }
  0x22   :  { %209 = vmatmul.mubr.bf16.vlgmr.msra.gmra.mxu0 %v24_v13 }
  0xe2   :  { %v210_v15 = vpop.f32.mrf.mxu0 }
  0xe3   :  { %v139_v17 = vadd.f32 %v210_v15, %v173_v14 }
  0xe4   :  { %v130_v18 = vpop.f32.mrf.mxu0 }
  0xe5   :  { %v151_v20 = vadd.f32 %v147_v16, %v139_v17  ;;  %v131_v21 = vadd.f32 %v173_v14, %v130_v18 }
  0xe6   :  { %v211_v22 = vpop.f32.mrf.mxu0 }
  0xe7   :  { %155 = vst [vmem:[#allocation2 + $0x10] sm:$0xff] %v151_v20  ;;  %v149_v24 = vadd.f32 %v145_v19, %v131_v21  ;;  %v142_v25 = vadd.f32 %v211_v22, %v173_v14 }
  0xe8   :  { %v133_v26 = vpop.f32.mrf.mxu0 }
  0xe9   :  { %153 = vst [vmem:[#allocation2] sm:$0xff] %v149_v24  ;;  %v152_v28 = vadd.f32 %v148_v23, %v142_v25  ;;  %v134_v29 = vadd.f32 %v173_v14, %v133_v26 }
  0xeb   :  { %156 = vst [vmem:[#allocation2 + $0x18] sm:$0xff] %v152_v28  ;;  %v150_v30 = vadd.f32 %v146_v27, %v134_v29 }
  0xed   :  { %154 = vst [vmem:[#allocation2 + $0x8] sm:$0xff] %v150_v30 }
  0xee   :  { %234 = shalt.err (!%p231_p4)
}
  0xef   :  { %s246_s23 = smov 128   ;;  %s247_s24 = smov 8  }
  0xf0   :  { %168 = dma.vmem_to_hbm [thread:$0]  %s163_s19, 512, %s331_s4, [#allocation3], %s246_s23, %s246_s23, %s247_s24  }
  0xf1   :  { %243 = dma.done.wait [#allocation3], 512  }
  0xf2   :  { %244 = vsyncadd [#allocation3], 4294966784 }
  0xf3   :  { %172 = vsyncpa [#allocation3], 1 }

</bundles_post_ra>
